<compile_context>
chip_gen: v7x
topology: tpu7x:2x2x1
jax: 0.10.0
libtpu: 0.0.40
codegen_flags: <defaults>
</compile_context>

<pallas_src>
import math

import jax
import jax.numpy as jnp
from jax.experimental import pallas as pl
from jax.experimental.pallas import tpu as pltpu


# ---------------------------------------------------------------------------
# Kernel (shared by every path; the bias block is pre-shaped as (1, TL) or
# (TR, 1) so the broadcast is a free vreg splat, never a materialized expand)
# ---------------------------------------------------------------------------
def _add_bias_kernel(x_ref, b_ref, o_ref):
    o_ref[...] = x_ref[...] + b_ref[...]


# ---------------------------------------------------------------------------
# Generation-aware tile budget
# ---------------------------------------------------------------------------
def _chip_budget():
    """(per-x-block byte budget, explicit vmem_limit_bytes or None)."""
    try:
        kind = jax.devices()[0].device_kind.lower()
    except Exception:
        kind = ""
    if "v7" in kind:
        # 3.2 TB/s HBM: 2 MiB tiles leave ~25-30% per-step overhead; use ~6 MiB
        # tiles and raise the scoped limit (stay well under 64 MiB physical).
        return 6 * 1024 * 1024, 48 << 20
    if "v6" in kind:
        # 4 MiB tiles -> (x+out) double-buffered = 16 MiB, under the 32 MiB default.
        return 4 * 1024 * 1024, None
    # v5e and unknown chips: 2 MiB tiles fit the 16 MiB scoped-VMEM default.
    return 2 * 1024 * 1024, None


def _sublane_pack(itemsize):
    # Rows per packed sublane tile: f32 -> 8, bf16 -> 16, int8/fp8 -> 32.
    return max(8, 32 // max(1, itemsize))


def _pick_lane_tile(L, itemsize, budget, sub):
    """Last-dim tile: full extent, or a multiple of 128 small enough that even
    the minimum (one sublane-pack) row tile keeps the x block within budget."""
    max_lanes = max(128, (budget // (sub * itemsize)) // 128 * 128)
    if L <= max_lanes:
        return L                      # full extent -> no (., 128) constraint
    return max_lanes                  # multiple of 128


def _pick_row_tile(R, TL, itemsize, budget, sub):
    """Second-minor tile: full extent, or a sublane-pack multiple within budget."""
    max_rows = max(sub, budget // max(1, TL * itemsize))
    if R <= max_rows:
        return R                      # full extent -> no (8, .) constraint
    return max(sub, (max_rows // sub) * sub)


# ---------------------------------------------------------------------------
# Generic launcher: out[r, l] = x2d[r, l] + bias (row (1, L) or column (R, 1))
# ---------------------------------------------------------------------------
def _launch(x2d, bias2d, *, bias_is_row):
    R, L = x2d.shape
    itemsize = jnp.dtype(x2d.dtype).itemsize
    budget, vmem_limit = _chip_budget()
    sub = _sublane_pack(itemsize)
    TL = _pick_lane_tile(L, itemsize, budget, sub)
    TR = _pick_row_tile(R, TL, itemsize, budget, sub)
    nR, nL = pl.cdiv(R, TR), pl.cdiv(L, TL)

    # Collapse size-1 grid axes; otherwise put the axis with more blocks first
    # so megacore (v7x) gets balanced halves.  Constant bias index_maps keep
    # the bias resident (fetched once) whenever its block covers the array.
    if nL == 1:
        grid = (nR,)
        x_map = lambda i: (i, 0)
        b_map = (lambda i: (0, 0)) if bias_is_row else (lambda i: (i, 0))
    elif nR == 1:
        grid = (nL,)
        x_map = lambda j: (0, j)
        b_map = (lambda j: (0, j)) if bias_is_row else (lambda j: (0, 0))
    elif nR >= nL:
        grid = (nR, nL)
        x_map = lambda i, j: (i, j)
        b_map = (lambda i, j: (0, j)) if bias_is_row else (lambda i, j: (i, 0))
    else:
        grid = (nL, nR)
        x_map = lambda j, i: (i, j)
        b_map = (lambda j, i: (0, j)) if bias_is_row else (lambda j, i: (i, 0))

    b_block = (1, TL) if bias_is_row else (TR, 1)

    cp_kwargs = dict(dimension_semantics=("parallel",) * len(grid))
    if vmem_limit is not None:
        cp_kwargs["vmem_limit_bytes"] = vmem_limit

    return pl.pallas_call(
        _add_bias_kernel,
        out_shape=jax.ShapeDtypeStruct((R, L), x2d.dtype),
        grid_spec=pltpu.PrefetchScalarGridSpec(
            num_scalar_prefetch=0,
            grid=grid,
            in_specs=[
                pl.BlockSpec((TR, TL), x_map),
                pl.BlockSpec(b_block, b_map),
            ],
            out_specs=pl.BlockSpec((TR, TL), x_map),
        ),
        compiler_params=pltpu.CompilerParams(**cp_kwargs),
    )(x2d, bias2d)


# ---------------------------------------------------------------------------
# Wrapper (mirrors AddBias.forward; bias_param is the stored (C, 1) parameter)
# ---------------------------------------------------------------------------
def add_bias(x, bias_param):
    C = bias_param.shape[0]
    bias_param = bias_param.astype(x.dtype)

    if x.ndim == 2:
        # bias = self._bias.t().view(1, -1) -> (1, C), broadcast over rows.
        N = x.shape[0]
        assert x.shape[1] == C
        bias_row = bias_param.reshape(1, C)
        if C < 128:
            # Lane-densify: natural (N, C) with C=4 leaves 4/128 valid lanes
            # per vreg row (masked partial stores).  A contiguous row-major
            # reshape to lcm(C,128)-wide rows is a free metadata op; the bias
            # pattern within each new row is just the bias repeated.
            Lw = math.lcm(C, 128)
            if (N * C) % Lw == 0:
                xf = x.reshape((N * C) // Lw, Lw)
                bf = jnp.tile(bias_row, (1, Lw // C))          # (1, Lw)
                return _launch(xf, bf, bias_is_row=True).reshape(N, C)
        # Fallback (awkward remainder or already wide C): natural layout.
        return _launch(x, bias_row, bias_is_row=True)

    elif x.ndim == 4:
        # bias = self._bias.t().view(1, -1, 1, 1): varies along C only.
        N, Cx, H, W = x.shape
        assert Cx == C
        L = H * W
        if L >= 128 and L % 128 == 0:
            # Lane-dense (N*C, H*W) slab; bias is an (N*C, 1) column
            # (trivial bytes), broadcast over lanes inside the kernel.
            xf = x.reshape(N * C, L)
            bcol = jnp.tile(bias_param, (N, 1))                # (N*C, 1)
            return _launch(xf, bcol, bias_is_row=False).reshape(N, C, H, W)
        # Small / unaligned spatial maps: merge C into the lane axis so lanes
        # stay >=128-wide; bias row repeats each channel value H*W times.
        xf = x.reshape(N, C * L)
        brow = jnp.repeat(bias_param.reshape(C), L).reshape(1, C * L)
        return _launch(xf, brow, bias_is_row=True).reshape(N, C, H, W)

    raise ValueError(f"AddBias expects 2-D or 4-D input, got {x.ndim}-D")


# ---------------------------------------------------------------------------
# Demo / self-check
# ---------------------------------------------------------------------------
if __name__ == "__main__":
    key = jax.random.PRNGKey(0)
    k1, k2, k3, k4, k5 = jax.random.split(key, 5)

    C = 4
    # AddBias stores bias.unsqueeze(1) -> parameter shape (C, 1)
    bias_param = jax.random.normal(k1, (C, 1), dtype=jnp.float32)

    # 4-D, 128-aligned spatial -> (N*C, H*W) column-bias path
    x4 = jax.random.normal(k2, (2, C, 16, 16), dtype=jnp.float32)
    out4 = jax.block_until_ready(add_bias(x4, bias_param))
    ref4 = x4 + bias_param.reshape(1, C, 1, 1)
    assert out4.shape == x4.shape
    assert jnp.allclose(out4, ref4, atol=1e-6), "4-D (aligned) AddBias mismatch"

    # 4-D, small/unaligned spatial -> (N, C*H*W) row-bias path
    x4s = jax.random.normal(k3, (2, C, 7, 7), dtype=jnp.float32)
    out4s = jax.block_until_ready(add_bias(x4s, bias_param))
    ref4s = x4s + bias_param.reshape(1, C, 1, 1)
    assert jnp.allclose(out4s, ref4s, atol=1e-6), "4-D (small) AddBias mismatch"

    # 2-D, awkward remainder -> natural-layout fallback
    x2 = jax.random.normal(k4, (8, C), dtype=jnp.float32)
    out2 = jax.block_until_ready(add_bias(x2, bias_param))
    ref2 = x2 + bias_param.reshape(1, C)
    assert jnp.allclose(out2, ref2, atol=1e-6), "2-D (fallback) AddBias mismatch"

    # 2-D, divisible -> lane-dense reshape path
    x2d = jax.random.normal(k5, (64, C), dtype=jnp.float32)
    out2d = jax.block_until_ready(add_bias(x2d, bias_param))
    ref2d = x2d + bias_param.reshape(1, C)
    assert jnp.allclose(out2d, ref2d, atol=1e-6), "2-D (dense) AddBias mismatch"

    print("KERNEL_OK")
</pallas_src>

<mosaic_0001>
module attributes {stable_mosaic.version = 11 : i64} {
  func.func @_add_bias_kernel(%arg0: i32, %arg1: memref<8x256xf32, #tpu.memory_space<vmem>>, %arg2: memref<8x1xf32, #tpu.memory_space<vmem>>, %arg3: memref<8x256xf32, #tpu.memory_space<vmem>>) attributes {dimension_semantics = [#tpu.dimension_semantics<parallel>], iteration_bounds = array<i64: 1>, scalar_prefetch = 0 : i64, scratch_operands = 0 : i64, tpu.core_type = #tpu.core_type<tc>, window_params = [{transform_indices = @transform_0, window_bounds = array<i64: 8, 256>}, {transform_indices = @transform_1, window_bounds = array<i64: 8, 1>}, {transform_indices = @transform_2, window_bounds = array<i64: 8, 256>}]} {
    %c0 = arith.constant 0 : index
    %c0_0 = arith.constant 0 : index
    %0 = vector.load %arg1[%c0, %c0_0] : memref<8x256xf32, #tpu.memory_space<vmem>>, vector<8x256xf32>
    %c0_1 = arith.constant 0 : index
    %c0_2 = arith.constant 0 : index
    %1 = vector.load %arg2[%c0_1, %c0_2] : memref<8x1xf32, #tpu.memory_space<vmem>>, vector<8x1xf32>
    %2 = vector.broadcast %1 : vector<8x1xf32> to vector<8x256xf32>
    %3 = arith.addf %0, %2 : vector<8x256xf32>
    %c0_3 = arith.constant 0 : index
    %c0_4 = arith.constant 0 : index
    %4 = vector.load %arg3[%c0_3, %c0_4] : memref<8x256xf32, #tpu.memory_space<vmem>>, vector<8x256xf32>
    tpu.vector_store %arg3[%c0_3, %c0_4], %3 {strides = array<i32>} : memref<8x256xf32, #tpu.memory_space<vmem>>, vector<8x256xf32>,
    return
  }
  func.func @transform_0(%arg0: i32) -> (i32, i32) {
    %c0_i32 = arith.constant 0 : i32
    %c0_i32_0 = arith.constant 0 : i32
    return %arg0, %c0_i32 : i32, i32
  }
  func.func @transform_1(%arg0: i32) -> (i32, i32) {
    %c0_i32 = arith.constant 0 : i32
    %c0_i32_0 = arith.constant 0 : i32
    return %arg0, %c0_i32 : i32, i32
  }
  func.func @transform_2(%arg0: i32) -> (i32, i32) {
    %c0_i32 = arith.constant 0 : i32
    %c0_i32_0 = arith.constant 0 : i32
    return %arg0, %c0_i32 : i32, i32
  }
}

</mosaic_0001>

<bundles_post_ra>
// kernel: tpu_custom_call.1
= control target key start
LH: loop header
LB: loop body
LE: loop exit
PB: predicated region body
PF: predicated region fallthrough
CT: control target
= control target key end

     0   :  { %7 = vsyncpa [#allocation3], 0  ;;  %s148_s0 = inlined_call_operand.hbm [shape: f32[8,256], index: 0, kind: input, shape index: {}]   ;;  %s149_s1 = inlined_call_operand.vmem [shape: f32[8,1], index: 1, kind: input, shape index: {}]   ;;  %s150_s2 = inlined_call_operand.hbm [shape: f32[8,256], index: 2, kind: output, shape index: {}]  }
   0x1   :  { %8 = vsyncpa [#allocation4], 0  ;;  %s103_s9 = smov [#allocation2]   ;;  %s55_s13 = scalar_lea.hbm %s148_s0, 256 }
   0x2   :  { %s15_s10 = sshll.u32 %s103_s9, 4  ;;  %p56_p0 = scmp.ne.s32.totalorder %s148_s0, %s55_s13  ;;  %s16_s10 = int_to_ptr.vmem [resolvable:$true] %s15_s10 }
   0x3   :  { %p59_p1 = scmp.lt.u32.totalorder %s55_s13, %s148_s0 }
   0x5   :  { %p61_p2 = pnand %p59_p1, %p56_p0 }
   0x7   :  { %64 = shalt.err (!%p61_p2)
}
   0x8   :  { %s65_s18 = scalar_lea.vmem %s16_s10, 256  ;;  %p70_p4 = scmp.lt.s32.totalorder %s16_s10, %s16_s10 }
   0x9   :  { %p66_p3 = scmp.ne.s32.totalorder %s16_s10, %s65_s18  ;;  %p71_p5 = scmp.lt.s32.totalorder %s65_s18, %s65_s18 }
   0xb   :  { %p72_p6 = por %p71_p5, %p70_p4 }
   0xd   :  { %p73_p7 = pnand %p72_p6, %p66_p3 }
   0xf   :  { %76 = shalt.err (!%p73_p7)
}
  0x10   :  { %18 = dma.hbm_to_vmem [thread:$0]  %s148_s0, 256, %s16_s10, [#allocation3]  }
  0x11   :  { %99 = dma.done.wait [#allocation3], 256  }
  0x12   :  { %100 = vsyncadd [#allocation3], 4294967040  ;;  %v104_v0 = vmov 0   ;;  %v26_v1 = vld [vmem:[%s149_s1] sm:$0xff]  ;;  %v25_v3 = vld [vmem:[#allocation2 + $0x8] sm:$0xff]  ;;  %s105_s23 = smov [#allocation5]  }
  0x13   :  { %54 = vset.pattern.permute.xlu0 %v104_v0  ;;  %v24_v2 = vld [vmem:[#allocation2] sm:$0xff]  ;;  %s42_s24 = sshll.u32 %s105_s23, 4  ;;  %s43_s24 = int_to_ptr.vmem [resolvable:$true] %s42_s24 }
  0x14   :  { %29 = vperm.xlu0 %54, %v26_v1   ;;  %s77_s0 = scalar_lea.vmem %s43_s24, 256  ;;  %p82_p9 = scmp.lt.s32.totalorder %s43_s24, %s43_s24 }
  0x15   :  { %p78_p8 = scmp.ne.s32.totalorder %s43_s24, %s77_s0  ;;  %p83_p10 = scmp.lt.s32.totalorder %s77_s0, %s77_s0 }
  0x17   :  { %p84_p11 = por %p83_p10, %p82_p9 }
  0x19   :  { %p85_p12 = pnand %p84_p11, %p78_p8 }
  0x93   :  { %v30_v4 = vpop.permute.xlu0 %29 }
  0x94   :  { %v32_v5 = vadd.f32 %v30_v4, %v24_v2  ;;  %v33_v6 = vadd.f32 %v30_v4, %v25_v3 }
  0x96   :  { %34 = vst [vmem:[#allocation5] sm:$0xff] %v32_v5  ;;  %35 = vst [vmem:[#allocation5 + $0x8] sm:$0xff] %v33_v6 }
  0x97   :  { %88 = shalt.err (!%p85_p12)
}
  0x98   :  { %s89_s26 = scalar_lea.hbm %s150_s2, 256 }
  0x99   :  { %p90_p13 = scmp.ne.s32.totalorder %s150_s2, %s89_s26  ;;  %p93_p0 = scmp.lt.u32.totalorder %s89_s26, %s150_s2 }
  0x9b   :  { %p95_p1 = pnand %p93_p0, %p90_p13 }
  0x9d   :  { %98 = shalt.err (!%p95_p1)
}
  0x9e   :  { %45 = dma.vmem_to_hbm [thread:$0]  %s43_s24, 256, %s150_s2, [#allocation4]  }
  0x9f   :  { %101 = dma.done.wait [#allocation4], 256  }
  0xa0   :  { %102 = vsyncadd [#allocation4], 4294967040 }
  0xa1   :  { %49 = vsyncpa [#allocation3], 1 }
  0xa2   :  { %50 = vsyncpa [#allocation4], 1 }

</bundles_post_ra>
